<compile_context>
chip_gen: v7x
topology: tpu7x:2x2x1
jax: 0.10.0
libtpu: 0.0.40
codegen_flags: <defaults>
</compile_context>

<pallas_src>
import functools

import jax
import jax.numpy as jnp
from jax.experimental import pallas as pl
from jax.experimental.pallas import tpu as pltpu


def _round_up(n, m):
    return ((n + m - 1) // m) * m


def _pad_axis(x, axis, target):
    size = x.shape[axis]
    if size == target:
        return x
    pads = [(0, 0)] * x.ndim
    pads[axis] = (0, target - size)
    return jnp.pad(x, pads)


def _compute_dtype():
    # bf16 VPU/EUP exists on v6e / v7x; v5e and older keep the tanh path f32.
    try:
        kind = jax.devices()[0].device_kind.lower()
    except Exception:
        return jnp.float32
    if ("v6" in kind) or ("v7" in kind) or ("7x" in kind):
        return jnp.bfloat16
    return jnp.float32


def _vmem_capacity_bytes():
    try:
        return int(pltpu.get_tpu_info().vmem_capacity_bytes)
    except Exception:
        return 64 * 1024 * 1024  # conservative fallback: v7x per-TC VMEM


def _vmem_need_bytes(bt, Q, Hp, Kt, Kp, dvp, cbytes):
    """Rough per-step VMEM footprint (2x for double-buffered blocks)."""
    qp = bt * Q * Hp * cbytes
    kp = bt * Hp * Kt * cbytes
    v = bt * Kt * dvp * 2          # values kept in bf16
    bias = bt * 1 * Kt * 4
    outb = bt * Q * dvp * 4
    attnb = bt * Q * Kp * 4        # resident attn block / scores scratch
    acc = bt * Q * dvp * 4
    feat = bt * Q * Hp * Kt * cbytes   # live additive-feature temporary
    misc = 4 * bt * max(Q, 8) * 128 * 4
    return 2 * (qp + kp + v + bias + outb + attnb) + acc + 2 * feat + misc


def _pick_block_b(B, Q, Hp, Kt, Kp, dvp, cbytes, budget):
    divisors = [d for d in range(1, B + 1) if B % d == 0]
    target_blocks = min(B, 4)   # >= 2 parallel blocks per v7x TensorCore when possible
    best = 1
    for bt in divisors:
        if (_vmem_need_bytes(bt, Q, Hp, Kt, Kp, dvp, cbytes) <= budget
                and (B // bt) >= target_blocks):
            best = max(best, bt)
    return best


def _additive_attn_kernel(qp_ref, kpT_ref, v_ref, bias_ref, wv_ref,   # inputs
                          out_ref, attn_ref,                           # outputs
                          m_ref, l_ref, acc_ref,                       # scratch
                          *, block_k):
    k_idx = pl.program_id(1)

    @pl.when(k_idx == 0)
    def _():
        m_ref[...] = jnp.full_like(m_ref, -1e30)
        l_ref[...] = jnp.zeros_like(l_ref)
        acc_ref[...] = jnp.zeros_like(acc_ref)

    # ---- additive scores for this key tile --------------------------------
    # feat layout (Bt, Q, Hp, Kt): the 128-wide key tile is on the lane axis,
    # so the VPU add / EUP tanh run at full lane occupancy even when H < 128.
    qp = qp_ref[...]                                     # (Bt, Q, Hp)   cdt
    kt = kpT_ref[...]                                    # (Bt, Hp, Kt)  cdt
    feat = jnp.tanh(qp[:, :, :, None] + kt[:, None, :, :])   # (Bt, Q, Hp, Kt)
    wv = wv_ref[...]                                     # (Hp, 1)       cdt
    scores = jnp.sum(feat * wv[None, None, :, :], axis=2,
                     dtype=jnp.float32)                  # (Bt, Q, Kt) f32

    # masked_softmax masking: 0 -> keep, -1e6 -> masked real column (torch
    # sentinel), -inf -> padding column (gets exactly zero weight).
    bias = bias_ref[...]                                 # (Bt, 1, Kt) f32
    scores = jnp.where(bias == 0.0, scores, bias)

    # Stash raw masked scores; the attn output block is resident across the
    # key grid axis and doubles as the scores scratch until finalization.
    k_off = pl.multiple_of(k_idx * block_k, block_k)
    attn_ref[:, :, pl.ds(k_off, block_k)] = scores

    # ---- online softmax update --------------------------------------------
    m_prev = m_ref[...]                                  # (Bt, Q, 1)
    m_new = jnp.maximum(m_prev, jnp.max(scores, axis=-1, keepdims=True))
    alpha = jnp.exp(m_prev - m_new)
    p = jnp.exp(scores - m_new)                          # (Bt, Q, Kt) f32
    l_ref[...] = alpha * l_ref[...] + jnp.sum(p, axis=-1, keepdims=True)
    acc_ref[...] = alpha * acc_ref[...] + jnp.einsum(
        "bqk,bkd->bqd", p.astype(v_ref.dtype), v_ref[...],
        preferred_element_type=jnp.float32)
    m_ref[...] = m_new

    # ---- finalize on the last key tile -------------------------------------
    @pl.when(k_idx == pl.num_programs(1) - 1)
    def _():
        inv_l = 1.0 / l_ref[...]                         # exact: rows sum to 1
        out_ref[...] = (acc_ref[...] * inv_l).astype(out_ref.dtype)
        s_all = attn_ref[...]                            # (Bt, Q, Kp) raw scores
        attn_ref[...] = (jnp.exp(s_all - m_ref[...]) * inv_l).astype(attn_ref.dtype)


def additive_attention(queries, keys, values, valid_lens, Wq, Wk, wv,
                       *, block_b=None, block_k=None, compute_dtype=None):
    B, Q, dq = queries.shape
    _, K, dk = keys.shape
    _, _, dv = values.shape
    H = Wq.shape[1]

    cdt = _compute_dtype() if compute_dtype is None else compute_dtype
    cbytes = jnp.dtype(cdt).itemsize

    # Hoisted batch-invariant projections: one large XLA matmul each (f32).
    qp = (queries.reshape(B * Q, dq).astype(jnp.float32)
          @ Wq.astype(jnp.float32)).reshape(B, Q, H)
    kp = (keys.reshape(B * K, dk).astype(jnp.float32)
          @ Wk.astype(jnp.float32)).reshape(B, K, H)

    # Paddings: K -> x128 (lane-dense scores / attn), dv -> x128 (lane-dense
    # out / MXU), H -> x16 (clean sublane packing; zero-padding H is exact
    # because tanh(0 + 0) * 0 == 0).
    Kp = _round_up(K, 128)
    dvp = _round_up(dv, 128)
    Hp = _round_up(H, 16)

    qp = _pad_axis(qp, 2, Hp).astype(cdt)                               # (B, Q, Hp)
    kpT = _pad_axis(jnp.swapaxes(_pad_axis(kp, 2, Hp), 1, 2), 2, Kp)    # (B, Hp, Kp)
    kpT = kpT.astype(cdt)
    wv_c = _pad_axis(wv.reshape(H, 1), 0, Hp).astype(cdt)               # (Hp, 1)
    v_b = _pad_axis(_pad_axis(values, 1, Kp), 2, dvp).astype(jnp.bfloat16)  # (B, Kp, dvp)

    # Additive mask bias (vectorized masking; no per-batch loop in-kernel).
    if valid_lens is None:
        valid = jnp.full((B,), K, dtype=jnp.int32)
    else:
        valid = valid_lens.astype(jnp.int32)
    col = jnp.arange(Kp, dtype=jnp.int32)
    bias = jnp.where(col[None, :] < valid[:, None], jnp.float32(0.0),
                     jnp.where(col[None, :] < K, jnp.float32(-1e6),
                               jnp.float32(-jnp.inf)))
    bias = bias[:, None, :]                                             # (B, 1, Kp)

    # ---- tile sizes ---------------------------------------------------------
    if block_k is None:
        block_k = next(c for c in (512, 256, 128) if Kp % c == 0)
    Kt = min(block_k, Kp)
    if Kp % Kt != 0 or Kt % 128 != 0:
        Kt = 128
    num_kt = Kp // Kt

    capacity = _vmem_capacity_bytes()
    budget = int(capacity * 0.6)
    if block_b is None:
        block_b = _pick_block_b(B, Q, Hp, Kt, Kp, dvp, cbytes, budget)
    while B % block_b != 0:
        block_b -= 1
    Bt = max(1, block_b)

    vmem_limit = max(32 * 1024 * 1024,
                     min(int(capacity * 0.85), 100 * 1024 * 1024))

    kernel = functools.partial(_additive_attn_kernel, block_k=Kt)

    grid_spec = pltpu.PrefetchScalarGridSpec(
        num_scalar_prefetch=0,
        grid=(B // Bt, num_kt),
        in_specs=[
            pl.BlockSpec((Bt, Q, Hp), lambda b, k: (b, 0, 0)),    # qp (resident over K)
            pl.BlockSpec((Bt, Hp, Kt), lambda b, k: (b, 0, k)),   # kpT (streamed)
            pl.BlockSpec((Bt, Kt, dvp), lambda b, k: (b, k, 0)),  # values (streamed, bf16)
            pl.BlockSpec((Bt, 1, Kt), lambda b, k: (b, 0, k)),    # mask bias (streamed)
            pl.BlockSpec((Hp, 1), lambda b, k: (0, 0)),           # wv
        ],
        out_specs=[
            pl.BlockSpec((Bt, Q, dvp), lambda b, k: (b, 0, 0)),   # out
            pl.BlockSpec((Bt, Q, Kp), lambda b, k: (b, 0, 0)),    # attention weights
        ],
        scratch_shapes=[
            pltpu.VMEM((Bt, Q, 1), jnp.float32),    # running max
            pltpu.VMEM((Bt, Q, 1), jnp.float32),    # running sum-exp
            pltpu.VMEM((Bt, Q, dvp), jnp.float32),  # output accumulator
        ],
    )

    out, attn = pl.pallas_call(
        kernel,
        out_shape=(
            jax.ShapeDtypeStruct((B, Q, dvp), jnp.float32),
            jax.ShapeDtypeStruct((B, Q, Kp), jnp.float32),
        ),
        grid_spec=grid_spec,
        compiler_params=pltpu.CompilerParams(
            dimension_semantics=("parallel", "arbitrary"),
            vmem_limit_bytes=vmem_limit,
        ),
    )(qp, kpT, v_b, bias, wv_c)

    return out[:, :, :dv], attn[:, :, :K]


def reference(queries, keys, values, valid_lens, Wq, Wk, wv):
    """Pure-JAX f32 reference mirroring the PyTorch forward (eval mode)."""
    qp = queries @ Wq                                          # (B, Q, H)
    kp = keys @ Wk                                             # (B, K, H)
    feat = jnp.tanh(qp[:, :, None, :] + kp[:, None, :, :])     # (B, Q, K, H)
    scores = jnp.einsum("bqkh,h->bqk", feat, wv[0])            # (B, Q, K)
    K = scores.shape[-1]
    if valid_lens is not None:
        mask = jnp.arange(K)[None, None, :] < valid_lens[:, None, None]
        scores = jnp.where(mask, scores, -1000000.0)
    w = jax.nn.softmax(scores, axis=-1)
    return jnp.einsum("bqk,bkd->bqd", w, values), w


if __name__ == "__main__":
    B, Q, K, dq, dk, dv, H = 2, 8, 8, 16, 16, 16, 32

    key = jax.random.PRNGKey(0)
    kq, kk, kv, kwq, kwk, kwv = jax.random.split(key, 6)

    queries = jax.random.normal(kq, (B, Q, dq), dtype=jnp.float32)
    keys_in = jax.random.normal(kk, (B, K, dk), dtype=jnp.float32)
    values = jax.random.normal(kv, (B, K, dv), dtype=jnp.float32)
    valid_lens = jnp.array([3, 6], dtype=jnp.int32)

    # Parameters (shapes from nn.LazyLinear(num_hiddens), no bias).
    Wq = 0.1 * jax.random.normal(kwq, (dq, H), dtype=jnp.float32)   # W_q.weight.T
    Wk = 0.1 * jax.random.normal(kwk, (dk, H), dtype=jnp.float32)   # W_k.weight.T
    wv = 0.1 * jax.random.normal(kwv, (1, H), dtype=jnp.float32)    # W_v.weight

    out, attn = additive_attention(queries, keys_in, values, valid_lens, Wq, Wk, wv)
    out = jax.block_until_ready(out)
    attn = jax.block_until_ready(attn)

    out_ref, attn_ref = reference(queries, keys_in, values, valid_lens, Wq, Wk, wv)
    # Tolerances account for bf16 feature/tanh/value path on v6e/v7x.
    assert out.shape == out_ref.shape and attn.shape == attn_ref.shape
    assert jnp.allclose(out, out_ref, atol=3e-2, rtol=3e-2)
    assert jnp.allclose(attn, attn_ref, atol=3e-2, rtol=3e-2)
    # attention rows over real keys must sum to 1 (exact normalization).
    assert jnp.allclose(jnp.sum(attn, axis=-1), 1.0, atol=1e-3)

    print("KERNEL_OK")
</pallas_src>

<mosaic_0001>
module attributes {stable_mosaic.version = 11 : i64} {
  func.func @_additive_attn_kernel(%arg0: i32, %arg1: i32, %arg2: memref<1x8x32xf32, #tpu.memory_space<vmem>>, %arg3: memref<1x32x128xf32, #tpu.memory_space<vmem>>, %arg4: memref<1x128x128xbf16, #tpu.memory_space<vmem>>, %arg5: memref<1x1x128xf32, #tpu.memory_space<vmem>>, %arg6: memref<32x1xf32, #tpu.memory_space<vmem>>, %arg7: memref<1x8x128xf32, #tpu.memory_space<vmem>>, %arg8: memref<1x8x128xf32, #tpu.memory_space<vmem>>, %arg9: memref<1x8x1xf32, #tpu.memory_space<vmem>>, %arg10: memref<1x8x1xf32, #tpu.memory_space<vmem>>, %arg11: memref<1x8x128xf32, #tpu.memory_space<vmem>>) attributes {dimension_semantics = [#tpu.dimension_semantics<parallel>, #tpu.dimension_semantics<arbitrary>], iteration_bounds = array<i64: 2, 1>, scalar_prefetch = 0 : i64, scratch_operands = 3 : i64, tpu.core_type = #tpu.core_type<tc>, window_params = [{transform_indices = @transform_0, window_bounds = array<i64: 1, 8, 32>}, {transform_indices = @transform_1, window_bounds = array<i64: 1, 32, 128>}, {transform_indices = @transform_2, window_bounds = array<i64: 1, 128, 128>}, {transform_indices = @transform_3, window_bounds = array<i64: 1, 1, 128>}, {pipeline_mode = #tpu.pipeline_mode<synchronous>, transform_indices = @transform_4, window_bounds = array<i64: 32, 1>}, {transform_indices = @transform_5, window_bounds = array<i64: 1, 8, 128>}, {transform_indices = @transform_6, window_bounds = array<i64: 1, 8, 128>}]} {
    %c0_i32 = arith.constant 0 : i32
    %0 = arith.cmpi eq, %arg1, %c0_i32 : i32
    %1 = arith.extui %0 : i1 to i32
    %c0_i32_0 = arith.constant 0 : i32
    %2 = arith.cmpi ne, %1, %c0_i32_0 : i32
    scf.if %2 {
      %cst_40 = arith.constant -1.000000e+30 : f32
      %55 = vector.broadcast %cst_40 : f32 to vector<1x8x1xf32>
      %c0_41 = arith.constant 0 : index
      %c0_42 = arith.constant 0 : index
      %c0_43 = arith.constant 0 : index
      %56 = vector.load %arg9[%c0_41, %c0_42, %c0_43] : memref<1x8x1xf32, #tpu.memory_space<vmem>>, vector<1x8x1xf32>
      tpu.vector_store %arg9[%c0_41, %c0_42, %c0_43], %55 {strides = array<i32>} : memref<1x8x1xf32, #tpu.memory_space<vmem>>, vector<1x8x1xf32>,
      %cst_44 = arith.constant 0.000000e+00 : f32
      %57 = vector.broadcast %cst_44 : f32 to vector<1x8x1xf32>
      %c0_45 = arith.constant 0 : index
      %c0_46 = arith.constant 0 : index
      %c0_47 = arith.constant 0 : index
      %58 = vector.load %arg10[%c0_45, %c0_46, %c0_47] : memref<1x8x1xf32, #tpu.memory_space<vmem>>, vector<1x8x1xf32>
      tpu.vector_store %arg10[%c0_45, %c0_46, %c0_47], %57 {strides = array<i32>} : memref<1x8x1xf32, #tpu.memory_space<vmem>>, vector<1x8x1xf32>,
      %cst_48 = arith.constant 0.000000e+00 : f32
      %59 = vector.broadcast %cst_48 : f32 to vector<1x8x128xf32>
      %c0_49 = arith.constant 0 : index
      %c0_50 = arith.constant 0 : index
      %c0_51 = arith.constant 0 : index
      %60 = vector.load %arg11[%c0_49, %c0_50, %c0_51] : memref<1x8x128xf32, #tpu.memory_space<vmem>>, vector<1x8x128xf32>
      tpu.vector_store %arg11[%c0_49, %c0_50, %c0_51], %59 {strides = array<i32>} : memref<1x8x128xf32, #tpu.memory_space<vmem>>, vector<1x8x128xf32>,
    } else {
    }
    %c0 = arith.constant 0 : index
    %c0_1 = arith.constant 0 : index
    %c0_2 = arith.constant 0 : index
    %3 = vector.load %arg2[%c0, %c0_1, %c0_2] : memref<1x8x32xf32, #tpu.memory_space<vmem>>, vector<1x8x32xf32>
    %c0_3 = arith.constant 0 : index
    %c0_4 = arith.constant 0 : index
    %c0_5 = arith.constant 0 : index
    %4 = vector.load %arg3[%c0_3, %c0_4, %c0_5] : memref<1x32x128xf32, #tpu.memory_space<vmem>>, vector<1x32x128xf32>
    %5 = vector.shape_cast %3 : vector<1x8x32xf32> to vector<1x8x32x1xf32>
    %6 = vector.shape_cast %4 : vector<1x32x128xf32> to vector<1x1x32x128xf32>
    %7 = vector.broadcast %5 : vector<1x8x32x1xf32> to vector<1x8x32x128xf32>
    %8 = vector.broadcast %6 : vector<1x1x32x128xf32> to vector<1x8x32x128xf32>
    %9 = arith.addf %7, %8 : vector<1x8x32x128xf32>
    %10 = math.tanh %9 : vector<1x8x32x128xf32>
    %c0_6 = arith.constant 0 : index
    %c0_7 = arith.constant 0 : index
    %11 = vector.load %arg6[%c0_6, %c0_7] : memref<32x1xf32, #tpu.memory_space<vmem>>, vector<32x1xf32>
    %12 = vector.shape_cast %11 : vector<32x1xf32> to vector<1x1x32x1xf32>
    %13 = vector.broadcast %12 : vector<1x1x32x1xf32> to vector<1x8x32x128xf32>
    %14 = arith.mulf %10, %13 : vector<1x8x32x128xf32>
    %cst = arith.constant dense<0.000000e+00> : vector<1x8x128xf32>
    %15 = vector.multi_reduction <add>, %14, %cst [2] : vector<1x8x32x128xf32> to vector<1x8x128xf32>
    %c0_8 = arith.constant 0 : index
    %c0_9 = arith.constant 0 : index
    %c0_10 = arith.constant 0 : index
    %16 = vector.load %arg5[%c0_8, %c0_9, %c0_10] : memref<1x1x128xf32, #tpu.memory_space<vmem>>, vector<1x1x128xf32>
    %cst_11 = arith.constant 0.000000e+00 : f32
    %17 = vector.broadcast %cst_11 : f32 to vector<1x1x128xf32>
    %18 = arith.cmpf oeq, %16, %17 : vector<1x1x128xf32>
    %19 = vector.shape_cast %18 : vector<1x1x128xi1> to vector<1x1x128xi1>
    %20 = vector.broadcast %19 : vector<1x1x128xi1> to vector<1x8x128xi1>
    %21 = vector.shape_cast %16 : vector<1x1x128xf32> to vector<1x1x128xf32>
    %22 = vector.broadcast %21 : vector<1x1x128xf32> to vector<1x8x128xf32>
    %23 = arith.select %20, %15, %22 : vector<1x8x128xi1>, vector<1x8x128xf32>
    %c128_i32 = arith.constant 128 : i32
    %24 = arith.muli %arg1, %c128_i32 : i32
    %25 = tpu.assume_multiple %24, 128 : i32
    %c0_12 = arith.constant 0 : index
    %c0_13 = arith.constant 0 : index
    %26 = arith.index_cast %25 : i32 to index
    %27 = vector.load %arg8[%c0_12, %c0_13, %26] : memref<1x8x128xf32, #tpu.memory_space<vmem>>, vector<1x8x128xf32>
    tpu.vector_store %arg8[%c0_12, %c0_13, %26], %23 {strides = array<i32>} : memref<1x8x128xf32, #tpu.memory_space<vmem>>, vector<1x8x128xf32>,
    %c0_14 = arith.constant 0 : index
    %c0_15 = arith.constant 0 : index
    %c0_16 = arith.constant 0 : index
    %28 = vector.load %arg9[%c0_14, %c0_15, %c0_16] : memref<1x8x1xf32, #tpu.memory_space<vmem>>, vector<1x8x1xf32>
    %cst_17 = arith.constant dense<0xFF800000> : vector<1x8xf32>
    %29 = vector.multi_reduction <maximumf>, %23, %cst_17 [2] : vector<1x8x128xf32> to vector<1x8xf32>
    %30 = vector.shape_cast %29 : vector<1x8xf32> to vector<1x8x1xf32>
    %31 = arith.maximumf %28, %30 : vector<1x8x1xf32>
    %32 = arith.subf %28, %31 : vector<1x8x1xf32>
    %33 = math.exp %32 : vector<1x8x1xf32>
    %34 = vector.broadcast %31 : vector<1x8x1xf32> to vector<1x8x128xf32>
    %35 = arith.subf %23, %34 : vector<1x8x128xf32>
    %36 = math.exp %35 : vector<1x8x128xf32>
    %c0_18 = arith.constant 0 : index
    %c0_19 = arith.constant 0 : index
    %c0_20 = arith.constant 0 : index
    %37 = vector.load %arg10[%c0_18, %c0_19, %c0_20] : memref<1x8x1xf32, #tpu.memory_space<vmem>>, vector<1x8x1xf32>
    %38 = arith.mulf %33, %37 : vector<1x8x1xf32>
    %cst_21 = arith.constant dense<0.000000e+00> : vector<1x8xf32>
    %39 = vector.multi_reduction <add>, %36, %cst_21 [2] : vector<1x8x128xf32> to vector<1x8xf32>
    %40 = vector.shape_cast %39 : vector<1x8xf32> to vector<1x8x1xf32>
    %41 = arith.addf %38, %40 : vector<1x8x1xf32>
    %c0_22 = arith.constant 0 : index
    %c0_23 = arith.constant 0 : index
    %c0_24 = arith.constant 0 : index
    %42 = vector.load %arg10[%c0_22, %c0_23, %c0_24] : memref<1x8x1xf32, #tpu.memory_space<vmem>>, vector<1x8x1xf32>
    tpu.vector_store %arg10[%c0_22, %c0_23, %c0_24], %41 {strides = array<i32>} : memref<1x8x1xf32, #tpu.memory_space<vmem>>, vector<1x8x1xf32>,
    %c0_25 = arith.constant 0 : index
    %c0_26 = arith.constant 0 : index
    %c0_27 = arith.constant 0 : index
    %43 = vector.load %arg11[%c0_25, %c0_26, %c0_27] : memref<1x8x128xf32, #tpu.memory_space<vmem>>, vector<1x8x128xf32>
    %44 = vector.broadcast %33 : vector<1x8x1xf32> to vector<1x8x128xf32>
    %45 = arith.mulf %44, %43 : vector<1x8x128xf32>
    %46 = arith.truncf %36 : vector<1x8x128xf32> to vector<1x8x128xbf16>
    %c0_28 = arith.constant 0 : index
    %c0_29 = arith.constant 0 : index
    %c0_30 = arith.constant 0 : index
    %47 = vector.load %arg4[%c0_28, %c0_29, %c0_30] : memref<1x128x128xbf16, #tpu.memory_space<vmem>>, vector<1x128x128xbf16>
    "tpu.trace_start"() <{level = 10 : i32, message = "bqk,bkd->bqd"}> : () -> ()
    %cst_31 = arith.constant dense<0.000000e+00> : vector<1x8x128xf32>
    %48 = tpu.matmul %46, %47, %cst_31 {dimension_numbers = #tpu.dot_dimension_numbers<[2], [1], [1], [2], [0, 0, 0, 1, 1, 2], [0], [0]>} : vector<1x8x128xbf16>, vector<1x128x128xbf16>, vector<1x8x128xf32> -> vector<1x8x128xf32>
    "tpu.trace_stop"() : () -> ()
    %49 = arith.addf %45, %48 : vector<1x8x128xf32>
    %c0_32 = arith.constant 0 : index
    %c0_33 = arith.constant 0 : index
    %c0_34 = arith.constant 0 : index
    %50 = vector.load %arg11[%c0_32, %c0_33, %c0_34] : memref<1x8x128xf32, #tpu.memory_space<vmem>>, vector<1x8x128xf32>
    tpu.vector_store %arg11[%c0_32, %c0_33, %c0_34], %49 {strides = array<i32>} : memref<1x8x128xf32, #tpu.memory_space<vmem>>, vector<1x8x128xf32>,
    %c0_35 = arith.constant 0 : index
    %c0_36 = arith.constant 0 : index
    %c0_37 = arith.constant 0 : index
    %51 = vector.load %arg9[%c0_35, %c0_36, %c0_37] : memref<1x8x1xf32, #tpu.memory_space<vmem>>, vector<1x8x1xf32>
    tpu.vector_store %arg9[%c0_35, %c0_36, %c0_37], %31 {strides = array<i32>} : memref<1x8x1xf32, #tpu.memory_space<vmem>>, vector<1x8x1xf32>,
    %c0_i32_38 = arith.constant 0 : i32
    %52 = arith.cmpi eq, %arg1, %c0_i32_38 : i32
    %53 = arith.extui %52 : i1 to i32
    %c0_i32_39 = arith.constant 0 : i32
    %54 = arith.cmpi ne, %53, %c0_i32_39 : i32
    scf.if %54 {
      %c0_40 = arith.constant 0 : index
      %c0_41 = arith.constant 0 : index
      %c0_42 = arith.constant 0 : index
      %55 = vector.load %arg10[%c0_40, %c0_41, %c0_42] : memref<1x8x1xf32, #tpu.memory_space<vmem>>, vector<1x8x1xf32>
      %cst_43 = arith.constant 1.000000e+00 : f32
      %56 = vector.broadcast %cst_43 : f32 to vector<1x8x1xf32>
      %57 = arith.divf %56, %55 : vector<1x8x1xf32>
      %c0_44 = arith.constant 0 : index
      %c0_45 = arith.constant 0 : index
      %c0_46 = arith.constant 0 : index
      %58 = vector.load %arg11[%c0_44, %c0_45, %c0_46] : memref<1x8x128xf32, #tpu.memory_space<vmem>>, vector<1x8x128xf32>
      %59 = vector.broadcast %57 : vector<1x8x1xf32> to vector<1x8x128xf32>
      %60 = arith.mulf %58, %59 : vector<1x8x128xf32>
      %c0_47 = arith.constant 0 : index
      %c0_48 = arith.constant 0 : index
      %c0_49 = arith.constant 0 : index
      %61 = vector.load %arg7[%c0_47, %c0_48, %c0_49] : memref<1x8x128xf32, #tpu.memory_space<vmem>>, vector<1x8x128xf32>
      tpu.vector_store %arg7[%c0_47, %c0_48, %c0_49], %60 {strides = array<i32>} : memref<1x8x128xf32, #tpu.memory_space<vmem>>, vector<1x8x128xf32>,
      %c0_50 = arith.constant 0 : index
      %c0_51 = arith.constant 0 : index
      %c0_52 = arith.constant 0 : index
      %62 = vector.load %arg8[%c0_50, %c0_51, %c0_52] : memref<1x8x128xf32, #tpu.memory_space<vmem>>, vector<1x8x128xf32>
      %c0_53 = arith.constant 0 : index
      %c0_54 = arith.constant 0 : index
      %c0_55 = arith.constant 0 : index
      %63 = vector.load %arg9[%c0_53, %c0_54, %c0_55] : memref<1x8x1xf32, #tpu.memory_space<vmem>>, vector<1x8x1xf32>
      %64 = vector.broadcast %63 : vector<1x8x1xf32> to vector<1x8x128xf32>
      %65 = arith.subf %62, %64 : vector<1x8x128xf32>
      %66 = math.exp %65 : vector<1x8x128xf32>
      %67 = vector.broadcast %57 : vector<1x8x1xf32> to vector<1x8x128xf32>
      %68 = arith.mulf %66, %67 : vector<1x8x128xf32>
      %c0_56 = arith.constant 0 : index
      %c0_57 = arith.constant 0 : index
      %c0_58 = arith.constant 0 : index
      %69 = vector.load %arg8[%c0_56, %c0_57, %c0_58] : memref<1x8x128xf32, #tpu.memory_space<vmem>>, vector<1x8x128xf32>
      tpu.vector_store %arg8[%c0_56, %c0_57, %c0_58], %68 {strides = array<i32>} : memref<1x8x128xf32, #tpu.memory_space<vmem>>, vector<1x8x128xf32>,
    } else {
    }
    return
  }
  func.func @transform_0(%arg0: i32, %arg1: i32) -> (i32, i32, i32) {
    %c0_i32 = arith.constant 0 : i32
    %c0_i32_0 = arith.constant 0 : i32
    %c0_i32_1 = arith.constant 0 : i32
    return %arg0, %c0_i32, %c0_i32_0 : i32, i32, i32
  }
  func.func @transform_1(%arg0: i32, %arg1: i32) -> (i32, i32, i32) {
    %c0_i32 = arith.constant 0 : i32
    %c0_i32_0 = arith.constant 0 : i32
    return %arg0, %c0_i32, %arg1 : i32, i32, i32
  }
  func.func @transform_2(%arg0: i32, %arg1: i32) -> (i32, i32, i32) {
    %c0_i32 = arith.constant 0 : i32
    %c0_i32_0 = arith.constant 0 : i32
    return %arg0, %arg1, %c0_i32 : i32, i32, i32
  }
  func.func @transform_3(%arg0: i32, %arg1: i32) -> (i32, i32, i32) {
    %c0_i32 = arith.constant 0 : i32
    %c0_i32_0 = arith.constant 0 : i32
    return %arg0, %c0_i32, %arg1 : i32, i32, i32
  }
  func.func @transform_4(%arg0: i32, %arg1: i32) -> (i32, i32) {
    %c0_i32 = arith.constant 0 : i32
    %c0_i32_0 = arith.constant 0 : i32
    %c0_i32_1 = arith.constant 0 : i32
    return %c0_i32, %c0_i32_0 : i32, i32
  }
  func.func @transform_5(%arg0: i32, %arg1: i32) -> (i32, i32, i32) {
    %c0_i32 = arith.constant 0 : i32
    %c0_i32_0 = arith.constant 0 : i32
    %c0_i32_1 = arith.constant 0 : i32
    return %arg0, %c0_i32, %c0_i32_0 : i32, i32, i32
  }
  func.func @transform_6(%arg0: i32, %arg1: i32) -> (i32, i32, i32) {
    %c0_i32 = arith.constant 0 : i32
    %c0_i32_0 = arith.constant 0 : i32
    %c0_i32_1 = arith.constant 0 : i32
    return %arg0, %c0_i32, %c0_i32_0 : i32, i32, i32
  }
}

</mosaic_0001>

<bundles_post_ra>
// kernel: tpu_custom_call.1
= control target key start
LH: loop header
LB: loop body
LE: loop exit
PB: predicated region body
PF: predicated region fallthrough
CT: control target
= control target key end

     0   :  { %s1977_s0 = inlined_call_operand.vmem [shape: f32[2,8,32], index: 0, kind: input, shape index: {}]   ;;  %s1978_s1 = inlined_call_operand.hbm [shape: f32[2,32,128], index: 1, kind: input, shape index: {}]   ;;  %s1979_s2 = inlined_call_operand.hbm [shape: bf16[2,128,128], index: 2, kind: input, shape index: {}]   ;;  %s1980_s3 = inlined_call_operand.vmem [shape: f32[2,1,128], index: 3, kind: input, shape index: {}]   ;;  %s1981_s4 = inlined_call_operand.vmem [shape: f32[32,1], index: 4, kind: input, shape index: {}]   ;;  %s1982_s5 = inlined_call_operand.hbm [shape: f32[2,8,128], index: 5, kind: output, shape index: {0}]   ;;  %s1983_s6 = inlined_call_operand.hbm [shape: f32[2,8,128], index: 6, kind: output, shape index: {1}]  }
   0x1   :  { %1987 = sst [smem:[#allocation18_spill]] %s1978_s1 }
   0x2   :  { %12 = vsyncpa [#allocation6], 0 }
   0x3   :  { %14 = vsyncpa [#allocation6 + $0x1], 0 }
   0x4   :  { %15 = vsyncpa [#allocation9], 0 }
   0x5   :  { %17 = vsyncpa [#allocation9 + $0x1], 0 }
   0x6   :  { %18 = vsyncpa [#allocation7], 0 }
   0x7   :  { %20 = vsyncpa [#allocation7 + $0x1], 0 }
   0x8   :  { %21 = vsyncpa [#allocation12], 0 }
   0x9   :  { %23 = vsyncpa [#allocation12 + $0x1], 0  ;;  %s1592_s21 = smov 0   ;;  %s1594_s22 = smov 0  }
   0xa   :  { %s1596_s23 = smov 0   ;;  %s1598_s24 = smov 0  }
   0xb   :  { %s1600_s25 = smov 0   ;;  %s1602_s26 = smov 0  }
   0xc LB: > { %s1142_s27 = sadd.s32 4294967295, %s1543_s26   ;;  %s1143_s28 = sadd.s32 4294967294, %s1543_s26   ;;  %s1543_s26 = sphi %s1602_s26, %s29_s26   ;;  %s1539_s25 = sphi %s1600_s25, %s2006_s25   ;;  %s1535_s24 = sphi %s1598_s24, %s2005_s24   ;;  %s1531_s23 = sphi %s1596_s23, %s2004_s23   ;;  %s1527_s22 = sphi %s1594_s22, %s2003_s22   ;;  %s1523_s21 = sphi %s1592_s21, %s2002_s21  }
   0xd   : > { %s41_s29 = sadd.s32 1, %s1539_s25  ;;  %s76_s30 = sadd.s32 1, %s1531_s23 }
   0xe   : > { %p43_p0 = scmp.ge.s32.totalorder %s41_s29, 2  ;;  %p83_p1 = scmp.ne.s32.totalorder %s1531_s23, %s1527_s22 }
   0xf   : > { %p84_p2 = scmp.eq.s32.totalorder %s1543_s26, 0  ;;  %p89_p3 = scmp.ne.s32.totalorder %s1527_s22, %s1523_s21 }
  0x10   : > { %s2008_s29 = smov (%p43_p0, %s41_s29), 0  ;;  %p90_p5 = scmp.eq.s32.totalorder %s1142_s27, 0 }
  0x11   : > { %1988 = sst [smem:[#allocation17_spill]] %s2008_s29  ;;  %p1633_p4 = por %p84_p2, %p83_p1 }
  0x12   : > { %s71_s8 = ssub.s32 %s1539_s25, %s2008_s29  ;;  %p190_p6 = scmp.eq.s32.totalorder %s1142_s27, 1 }
  0x13   : > { %p74_p7 = scmp.eq.s32.totalorder %s71_s8, 0  ;;  %p1639_p8 = por %p90_p5, %p89_p3 }
  0x14   : > { %p1643_p9 = por %p190_p6, %p83_p1  ;;  %p196_p10 = scmp.eq.s32.totalorder %s1143_s28, 1 }
  0x15   : > { %s1990_s9 = scalar_select %p1639_p8, 1, 0 }
  0x16   : > { %s1991_s10 = scalar_select %p1643_p9, 1, 0 }
  0x17   : > { %s1648_s11 = scalar_select %p74_p7, %s1531_s23, %s76_s30  }
  0x18   : > { %p1650_p11 = por %p196_p10, %p89_p3  ;;  %p1225_p13 = scmp.lt.s32.totalorder %s1543_s26, 2 }
  0x19   : > { %s1657_s13 = sand.u32 1, %s1531_s23   ;;  %s1172_s15 = sshll.u32 %s1539_s25, 9 }
  0x1a   : > { %s1992_s12 = scalar_select %p1650_p11, 1, 0 }
  0x1b   : > { %s1146_s14 = sshll.u32 %s1657_s13, 5  ;;  %s1993_s1 = sld [smem:[#allocation18_spill]] }
  0x1c   : > { %s256_s19 = scalar_lea.vmem [#allocation5], %s1146_s14  ;;  %p1670_p0 = pnand %p1225_p13, %p1633_p4 }
  0x1d   : > { %s264_s20 = sshll.u32 %s256_s19, 4  ;;  %s253_s28 = scalar_lea.sflag [#allocation6], %s1657_s13  ;;  %s1666_s20 = int_to_ptr.vmem [resolvable:$true] %s264_s20 }
  0x1e   : > { %p1367_p3 = pneg %p1670_p0 }
  0x21   : > { %s1664_s18 = scalar_lea.hbm %s1993_s1, %s1172_s15  ;;  %s1370_s7 = scalar_lea.hbm %s1993_s1, 1024 }
  0x22   : > { %s1365_s30 = scalar_lea.hbm %s1664_s18, 512  ;;  %p1371_p4 = scmp.lt.u32.totalorder %s1664_s18, %s1993_s1 }
  0x23   : > { %p1366_p2 = scmp.ne.s32.totalorder %s1664_s18, %s1365_s30  ;;  %p1372_p7 = scmp.lt.u32.totalorder %s1370_s7, %s1365_s30 }
  0x24   : > { %p1374_p13 = scmp.lt.u32.totalorder %s1365_s30, %s1664_s18 }
  0x25   : > { %p1368_p5 = pnand %p1367_p3, %p1366_p2  ;;  %p1373_p10 = por %p1372_p7, %p1371_p4 }
  0x27   : > { %p1369_p6 = pneg %p1368_p5  ;;  %p1375_p12 = por %p1374_p13, %p1373_p10 }
  0x29   : > { %p1376_p1 = pnand %p1375_p12, %p1369_p6 }
  0x2b   : > { %1379 = shalt.err (!%p1376_p1)
}
  0x2c   : > { %s1380_s17 = scalar_lea.vmem %s1666_s20, 512  ;;  %s1545_s19 = smov [#allocation5]  }
  0x2d   : > { %p1381_p2 = scmp.ne.s32.totalorder %s1666_s20, %s1380_s17  ;;  %s1385_s8 = sshll.u32 %s1545_s19, 4  ;;  %s1386_s8 = int_to_ptr.vmem [resolvable:$false] %s1385_s8 }
  0x2e   : > { %s1387_s14 = scalar_lea.vmem %s1386_s8, 1024  ;;  %p1388_p9 = scmp.lt.s32.totalorder %s1666_s20, %s1386_s8 }
  0x2f   : > { %p1383_p5 = pnand %p1381_p2, %p1367_p3  ;;  %p1389_p4 = scmp.lt.s32.totalorder %s1387_s14, %s1380_s17 }
  0x31   : > { %p1384_p11 = pneg %p1383_p5  ;;  %p1390_p7 = por %p1389_p4, %p1388_p9 }
  0x33   : > { %p1391_p10 = pnand %p1390_p7, %p1384_p11 }
  0x35   : > { %1394 = shalt.err (!%p1391_p10)
}
  0x36   : > { %s1546_s30 = smov 128   ;;  %s1547_s7 = smov 8  }
  0x37   : > { %1214 = dma.hbm_to_vmem [thread:$0]  (!%p1670_p0), %s1664_s18, 512, %s1666_s20, %s253_s28, %s1546_s30, %s1546_s30, %s1547_s7  }
  0x38   : > { %p304_p12 = scmp.lt.s32.totalorder %s1543_s26, 3  ;;  %s1149_s15 = sshll.u32 %s1657_s13, 6 }
  0x39   : > { %s1173_s16 = sshll.u32 %s1539_s25, 10  ;;  %p1995_p9 = scmp.ge.s32.totalorder %s1543_s26, 1 }
  0x3a   : > { %s1715_s14 = scalar_lea.hbm %s1979_s2, %s1173_s16  ;;  %s278_s1 = scalar_lea.vmem [#allocation8], %s1149_s15 }
  0x3b   : > { %p1708_p11 = pnand %p1995_p9, %p304_p12  ;;  %s287_s29 = sshll.u32 %s278_s1, 4  ;;  %s1717_s29 = int_to_ptr.vmem [resolvable:$true] %s287_s29 }
  0x3c   : > { %s275_s18 = scalar_lea.sflag [#allocation9], %s1657_s13  ;;  %s1395_s20 = scalar_lea.hbm %s1715_s14, 1024 }
  0x3d   : > { %p1396_p1 = scmp.ne.s32.totalorder %s1715_s14, %s1395_s20  ;;  %s1400_s7 = scalar_lea.hbm %s1979_s2, 2048 }
  0x3e   : > { %p1401_p2 = scmp.lt.u32.totalorder %s1715_s14, %s1979_s2  ;;  %p1402_p5 = scmp.lt.u32.totalorder %s1400_s7, %s1395_s20 }
  0x3f   : > { %p1398_p6 = pnand %p1396_p1, %p1367_p3  ;;  %p1404_p7 = scmp.lt.u32.totalorder %s1395_s20, %s1715_s14 }
  0x40   : > { %p1403_p4 = por %p1402_p5, %p1401_p2 }
  0x41   : > { %p1399_p13 = pneg %p1398_p6 }
  0x42   : > { %p1405_p10 = por %p1404_p7, %p1403_p4 }
  0x44   : > { %p1406_p12 = pnand %p1405_p10, %p1399_p13 }
  0x46   : > { %1409 = shalt.err (!%p1406_p12)
}
  0x47   : > { %s1410_s1 = scalar_lea.vmem %s1717_s29, 1024  ;;  %s1548_s15 = smov [#allocation8]  }
  0x48   : > { %p1411_p9 = scmp.ne.s32.totalorder %s1717_s29, %s1410_s1  ;;  %s1415_s8 = sshll.u32 %s1548_s15, 4  ;;  %s1416_s8 = int_to_ptr.vmem [resolvable:$false] %s1415_s8 }
  0x49   : > { %s1417_s28 = scalar_lea.vmem %s1416_s8, 2048  ;;  %p1418_p8 = scmp.lt.s32.totalorder %s1717_s29, %s1416_s8 }
  0x4a   : > { %p1413_p1 = pnand %p1411_p9, %p1367_p3  ;;  %p1419_p2 = scmp.lt.s32.totalorder %s1417_s28, %s1410_s1 }
  0x4c   : > { %p1414_p6 = pneg %p1413_p1  ;;  %p1420_p5 = por %p1419_p2, %p1418_p8 }
  0x4e   : > { %p1421_p4 = pnand %p1420_p5, %p1414_p6 }
  0x50   : > { %1424 = shalt.err (!%p1421_p4)
}
  0x51   : > { %s1549_s20 = smov 64   ;;  %s1550_s30 = smov 4  }
  0x52   : > { %1217 = dma.hbm_to_vmem [thread:$0]  (!%p1670_p0), %s1715_s14, 1024, %s1717_s29, %s275_s18, %s1549_s20, %s1549_s20, %s1550_s30  }
  0x53   : > { %308 = sbr.rel (%p1708_p11) target bundleno = 947 (0x3b3), region = 40  ;;  %s1748_s7 = sand.u32 (!%p1708_p11), 1, %s1527_s22  }
  0x54   : > { %s1153_s16 = sshll.u32 (!%p1708_p11), %s1748_s7, 5  ;;  %s311_s19 = scalar_lea.sflag (!%p1708_p11), [#allocation6], %s1748_s7 }
  0x55   : > { %s1752_s1 = scalar_lea.vmem (!%p1708_p11), [#allocation5], %s1153_s16  ;;  %p1997_p8 = scmp.ne.s32.totalorder (!%p1708_p11), %s1990_s9, 0 }
  0x5a   : > { %1506 = dma.done.wait (%p1997_p8), %s311_s19, 512  }
  0x5b   : > { %1508 = vsyncadd (%p1997_p8), %s311_s19, 4294966784  ;;  %s1154_s29 = sshll.u32 %s1748_s7, 6  ;;  %s320_s13 = scalar_lea.sflag [#allocation9], %s1748_s7 }
  0x5c   : > { %s1760_s27 = scalar_lea.vmem [#allocation8], %s1154_s29 }
  0x5d   : > { %1510 = dma.done.wait (%p1997_p8), %s320_s13, 1024  }
  0x5e   : > { %1512 = vsyncadd (%p1997_p8), %s320_s13, 4294966272  ;;  %p372_p0 = scmp.lt.s32.totalorder %s1535_s24, 1  ;;  %v397_v0 = vlaneseq  ;;  %v1551_v1 = vmov 0   ;;  %v614_v22 = vld [vmem:[%s1981_s4 + $0x8] sm:$0xff]  ;;  %v613_v23 = vld [vmem:[%s1981_s4] sm:$0xff]  ;;  %vm388_vm1 = vcmask 7168  }
  0x5f   : > { %1284 = vset.pattern.permute.xlu1 %v1551_v1  ;;  %1283 = vset.pattern.permute.xlu0 %v1551_v1  ;;  %v615_v24 = vld [vmem:[%s1981_s4 + $0x10] sm:$0xff]  ;;  %v616_v25 = vld [vmem:[%s1981_s4 + $0x18] sm:$0xff]  ;;  %v1552_v26 = vmov -1e+30   ;;  %v1806_v53 = vld [vmem:[%s1752_s1 + $0x10] sm:$0xff]  ;;  %vm763_vm2 = vcmask 1041409  }
  0x60   : > { %s373_s17 = scalar_select %p372_p0, %s1535_s24, 1  ;;  %v398_v2 = vshrl.u32 %v397_v0, 7  ;;  %389 = vst.msk [vmem:[#allocation2] sm:$0xff] %vm388_vm1, %v1552_v26  ;;  %v1796_v45 = vld [vmem:[%s1752_s1] sm:$0xff]  ;;  %v1799_v46 = vld [vmem:[%s1752_s1 + $0x8] sm:$0xff]  ;;  %v1815_v62 = vld [vmem:[%s1752_s1 + $0x18] sm:$0xff] }
  0x61   : > { %vm765_vm3 = vcmask 1042434   ;;  %vm767_vm4 = vcmask 1043459   ;;  %vm769_vm5 = vcmask 1044484   ;;  %vm771_vm6 = vcmask 1045509   ;;  %s1155_s1 = sshll.u32 %s1748_s7, 3  ;;  %s948_s13 = scalar_lea.sflag [#allocation7], %s1748_s7 }
  0x62   : > { %s1157_s14 = sshll.u32 %s373_s17, 3  ;;  %v418_v3 = vsub.s32 1, %v398_v2  ;;  %v1768_v4 = vsub.s32 0, %v398_v2  ;;  %s382_s8 = scalar_lea.vmem %s1980_s3, %s373_s17  ;;  %v437_v9 = vsub.s32 2, %v398_v2  ;;  %v456_v12 = vsub.s32 3, %v398_v2 }
  0x63   : > { %s375_s20 = scalar_lea.vmem %s1977_s0, %s1157_s14  ;;  %v1776_v6 = vld [vmem:[%s382_s8] sm:$0x1]  ;;  %v475_v14 = vsub.s32 4, %v398_v2  ;;  %v494_v16 = vsub.s32 5, %v398_v2  ;;  %v513_v18 = vsub.s32 6, %v398_v2  ;;  %v532_v20 = vsub.s32 7, %v398_v2 }
  0x64   : > { %v392_v5 = vld [vmem:[%s375_s20] sm:$0xff]  ;;  %vm742_vm0 = vcmp.eq.f32.partialorder %v1776_v6, 0.0  ;;  %vm773_vm7 = vcmask 1046534   ;;  %vm775_vm8 = vcmask 1047559   ;;  %vm1554_vm10 = vmmov 0   ;;  %s364_s15 = scalar_lea.vmem [#allocation10], %s1155_s1 }
  0x65   : > { %v419_v7 = vrot.slane %v392_v5, %v418_v3  ;;  %v400_v8 = vrot.slane %v392_v5, %v1768_v4  ;;  %v1780_v10 = vsel %vm742_vm0, 1, %v1551_v1  ;;  %v438_v11 = vrot.slane %v392_v5, %v437_v9  ;;  %s966_s8 = sshll.u32 %s364_s15, 4  ;;  %s371_s28 = scalar_lea.vmem [#allocation11], %s1155_s1  ;;  %s1901_s8 = int_to_ptr.vmem [resolvable:$true] %s966_s8 }
  0x66   : > { %v457_v13 = vrot.slane %v392_v5, %v456_v12  ;;  %v476_v15 = vrot.slane %v392_v5, %v475_v14  ;;  %v495_v17 = vrot.slane %v392_v5, %v494_v16  ;;  %v514_v19 = vrot.slane %v392_v5, %v513_v18  ;;  %s979_s9 = sshll.u32 %s371_s28, 4  ;;  %s1425_s17 = scalar_lea.vmem %s1901_s8, 128  ;;  %s1908_s9 = int_to_ptr.vmem [resolvable:$true] %s979_s9 }
  0x67   : > { %421 = vbcast.lane.b32.xlu1 %v419_v7, 256  ;;  %402 = vbcast.lane.b32.xlu0 %v400_v8, 256  ;;  %v533_v21 = vrot.slane %v392_v5, %v532_v20  ;;  %p1426_p3 = scmp.ne.s32.totalorder %s1901_s8, %s1425_s17  ;;  %p1998_p11 = scmp.ne.s32.totalorder %s1991_s10, 0 }
  0x68   : > { %s1555_s14 = smov [#allocation10]  }
  0x69   : > { %p1427_p13 = pnand %p1426_p3, %p1998_p11  ;;  %s1429_s18 = sshll.u32 %s1555_s14, 4  ;;  %s1430_s18 = int_to_ptr.vmem [resolvable:$false] %s1429_s18 }
  0x6a   : > { %s1431_s1 = scalar_lea.vmem %s1430_s18, 256  ;;  %p1432_p10 = scmp.lt.s32.totalorder %s1901_s8, %s1430_s18 }
  0x6b   : > { %425 = vbcast.lane.b32.xlu1 %v419_v7, 264  ;;  %406 = vbcast.lane.b32.xlu0 %v400_v8, 264  ;;  %p1428_p7 = pneg %p1427_p13  ;;  %p1433_p12 = scmp.lt.s32.totalorder %s1431_s1, %s1425_s17 }
  0x6d   : > { %p1434_p9 = por %p1433_p12, %p1432_p10 }
  0x6f   : > { %444 = vbcast.lane.b32.xlu1 %v438_v11, 264  ;;  %440 = vbcast.lane.b32.xlu0 %v438_v11, 256  ;;  %p1435_p1 = pnand %p1434_p9, %p1428_p7 }
  0x73   : > { %429 = vbcast.lane.b32.xlu1 %v419_v7, 272  ;;  %410 = vbcast.lane.b32.xlu0 %v400_v8, 272 }
  0x77   : > { %463 = vbcast.lane.b32.xlu1 %v457_v13, 264  ;;  %459 = vbcast.lane.b32.xlu0 %v457_v13, 256 }
  0x7b   : > { %478 = vbcast.lane.b32.xlu1 %v476_v15, 256  ;;  %448 = vbcast.lane.b32.xlu0 %v438_v11, 272 }
  0x7f   : > { %414 = vbcast.lane.b32.xlu1 %v400_v8, 280  ;;  %482 = vbcast.lane.b32.xlu0 %v476_v15, 264 }
  0x83   : > { %467 = vbcast.lane.b32.xlu1 %v457_v13, 272  ;;  %433 = vbcast.lane.b32.xlu0 %v419_v7, 280 }
  0x87   : > { %501 = vbcast.lane.b32.xlu1 %v495_v17, 264  ;;  %497 = vbcast.lane.b32.xlu0 %v495_v17, 256 }
  0x8b   : > { %486 = vbcast.lane.b32.xlu1 %v476_v15, 272  ;;  %452 = vbcast.lane.b32.xlu0 %v438_v11, 280 }
  0x8f   : > { %520 = vbcast.lane.b32.xlu1 %v514_v19, 264  ;;  %516 = vbcast.lane.b32.xlu0 %v514_v19, 256 }
  0x93   : > { %505 = vbcast.lane.b32.xlu1 %v495_v17, 272  ;;  %471 = vbcast.lane.b32.xlu0 %v457_v13, 280 }
  0x97   : > { %539 = vbcast.lane.b32.xlu1 %v533_v21, 264  ;;  %535 = vbcast.lane.b32.xlu0 %v533_v21, 256 }
  0x9b   : > { %624 = vperm.xlu1 %1284, %v614_v22   ;;  %619 = vperm.xlu0 %1283, %v613_v23  }
  0x9f   : > { %490 = vbcast.lane.b32.xlu1 %v476_v15, 280  ;;  %524 = vbcast.lane.b32.xlu0 %v514_v19, 272 }
  0xa3   : > { %509 = vbcast.lane.b32.xlu1 %v495_v17, 280  ;;  %543 = vbcast.lane.b32.xlu0 %v533_v21, 272 }
  0xa7   : > { %629 = vperm.xlu1 %1284, %v615_v24   ;;  %528 = vbcast.lane.b32.xlu0 %v514_v19, 280 }
  0xab   : > { %634 = vperm.xlu0 %1283, %v616_v25   ;;  %547 = vbcast.lane.b32.xlu1 %v533_v21, 280 }
  0xd9   : > { %v422_v27 = vpop.permute.xlu1 %421  ;;  %v403_v28 = vpop.permute.xlu0 %402 }
  0xda   : > { %v553_v49 = vadd.f32 %v422_v27, %v1796_v45  ;;  %v549_v50 = vadd.f32 %v403_v28, %v1796_v45 }
  0xdc   : > { %1293 = vtanh.f32 %v553_v49 }
  0xdd   : > { %v426_v29 = vpop.permute.xlu1 %425  ;;  %v407_v30 = vpop.permute.xlu0 %406  ;;  %1295 = vtanh.f32 %v549_v50 }
  0xde   : > { %v554_v51 = vadd.f32 %v426_v29, %v1799_v46  ;;  %v550_v52 = vadd.f32 %v407_v30, %v1799_v46 }
  0xe0   : > { %1297 = vtanh.f32 %v554_v51 }
  0xe1   : > { %v445_v31 = vpop.permute.xlu1 %444  ;;  %v441_v32 = vpop.permute.xlu0 %440  ;;  %1299 = vtanh.f32 %v550_v52 }
  0xe2   : > { %v558_v54 = vadd.f32 %v445_v31, %v1799_v46  ;;  %v557_v55 = vadd.f32 %v441_v32, %v1796_v45 }
  0xe4   : > { %1301 = vtanh.f32 %v558_v54 }
  0xe5   : > { %v430_v33 = vpop.permute.xlu1 %429  ;;  %v411_v34 = vpop.permute.xlu0 %410  ;;  %1303 = vtanh.f32 %v557_v55 }
  0xe6   : > { %v555_v58 = vadd.f32 %v430_v33, %v1806_v53  ;;  %v551_v59 = vadd.f32 %v411_v34, %v1806_v53  ;;  %v1294_v7 = vpop.eup %1293 }
  0xe7   : > { %v1296_v9 = vpop.eup %1295 }
  0xe8   : > { %1305 = vtanh.f32 %v555_v58 }
  0xe9   : > { %v464_v35 = vpop.permute.xlu1 %463  ;;  %v460_v36 = vpop.permute.xlu0 %459  ;;  %1307 = vtanh.f32 %v551_v59 }
  0xea   : > { %v562_v60 = vadd.f32 %v464_v35, %v1799_v46  ;;  %v561_v61 = vadd.f32 %v460_v36, %v1796_v45  ;;  %v1298_v12 = vpop.eup %1297 }
  0xeb   : > { %v1300_v14 = vpop.eup %1299 }
  0xec   : > { %1309 = vtanh.f32 %v562_v60 }
  0xed   : > { %v479_v37 = vpop.permute.xlu1 %478  ;;  %v449_v38 = vpop.permute.xlu0 %448  ;;  %1311 = vtanh.f32 %v561_v61 }
  0xee   : > { %v565_v63 = vadd.f32 %v479_v37, %v1796_v45  ;;  %v559_v0 = vadd.f32 %v449_v38, %v1806_v53  ;;  %v1302_v18 = vpop.eup %1301 }
  0xef   : > { %v1304_v20 = vpop.eup %1303 }
  0xf0   : > { %1313 = vtanh.f32 %v565_v63 }
  0xf1   : > { %v415_v39 = vpop.permute.xlu1 %414  ;;  %v483_v40 = vpop.permute.xlu0 %482  ;;  %1315 = vtanh.f32 %v559_v0 }
  0xf2   : > { %v552_v3 = vadd.f32 %v415_v39, %v1815_v62  ;;  %v566_v5 = vadd.f32 %v483_v40, %v1799_v46  ;;  %v1827_v22 = vpop.eup %1305 }
  0xf3   : > { %v1308_v24 = vpop.eup %1307 }
  0xf4   : > { %1317 = vtanh.f32 %v552_v3 }
  0xf5   : > { %v468_v41 = vpop.permute.xlu1 %467  ;;  %v434_v42 = vpop.permute.xlu0 %433  ;;  %1319 = vtanh.f32 %v566_v5 }
  0xf6   : > { %v563_v8 = vadd.f32 %v468_v41, %v1806_v53  ;;  %v556_v11 = vadd.f32 %v434_v42, %v1815_v62  ;;  %v1310_v28 = vpop.eup %1309 }
  0xf7   : > { %v1312_v30 = vpop.eup %1311 }
  0xf8   : > { %1321 = vtanh.f32 %v563_v8 }
  0xf9   : > { %v502_v43 = vpop.permute.xlu1 %501  ;;  %v498_v44 = vpop.permute.xlu0 %497  ;;  %1323 = vtanh.f32 %v556_v11 }
  0xfa   : > { %v570_v13 = vadd.f32 %v502_v43, %v1799_v46  ;;  %v569_v15 = vadd.f32 %v498_v44, %v1796_v45  ;;  %v1314_v32 = vpop.eup %1313 }
  0xfb   : > { %v1316_v34 = vpop.eup %1315 }
  0xfc   : > { %1325 = vtanh.f32 %v570_v13 }
  0xfd   : > { %v487_v47 = vpop.permute.xlu1 %486  ;;  %v453_v48 = vpop.permute.xlu0 %452  ;;  %1327 = vtanh.f32 %v569_v15 }
  0xfe   : > { %v567_v21 = vadd.f32 %v487_v47, %v1806_v53  ;;  %v560_v23 = vadd.f32 %v453_v48, %v1815_v62  ;;  %v1318_v37 = vpop.eup %1317 }
  0xff   : > { %v1320_v38 = vpop.eup %1319 }
 0x101   : > { %v521_v56 = vpop.permute.xlu1 %520  ;;  %v517_v57 = vpop.permute.xlu0 %516 }
 0x102   : > { %v574_v19 = vadd.f32 %v521_v56, %v1799_v46  ;;  %v573_v25 = vadd.f32 %v517_v57, %v1796_v45  ;;  %v1322_v42 = vpop.eup %1321 }
 0x103   : > { %v1324_v43 = vpop.eup %1323 }
 0x104   : > { %1329 = vtanh.f32 %v574_v19 }
 0x105   : > { %v506_v1 = vpop.permute.xlu1 %505  ;;  %v472_v2 = vpop.permute.xlu0 %471  ;;  %1331 = vtanh.f32 %v567_v21 }
 0x106   : > { %v571_v29 = vadd.f32 %v506_v1, %v1806_v53  ;;  %v564_v31 = vadd.f32 %v472_v2, %v1815_v62  ;;  %1333 = vtanh.f32 %v560_v23  ;;  %v1326_v50 = vpop.eup %1325 }
 0x107   : > { %1335 = vtanh.f32 %v573_v25  ;;  %v1328_v54 = vpop.eup %1327 }
 0x108   : > { %1337 = vtanh.f32 %v571_v29 }
 0x109   : > { %v540_v16 = vpop.permute.xlu1 %539  ;;  %v536_v17 = vpop.permute.xlu0 %535  ;;  %1339 = vtanh.f32 %v564_v31 }
 0x10a   : > { %v578_v33 = vadd.f32 %v540_v16, %v1799_v46  ;;  %v577_v39 = vadd.f32 %v536_v17, %v1796_v45 }
 0x10c   : > { %1341 = vtanh.f32 %v578_v33 }
 0x10e   : > { %v1330_v58 = vpop.eup %1329 }
 0x10f   : > { %v1332_v63 = vpop.eup %1331 }
 0x11a   : > { %v1831_v26 = vpop.permute.xlu1 %624  ;;  %v1833_v27 = vpop.permute.xlu0 %619 }
 0x11b   : > { %v638_v44 = vmul.f32 %v1300_v14, %v1831_v26  ;;  %v642_v46 = vmul.f32 %v1298_v12, %v1831_v26  ;;  %v637_v47 = vmul.f32 %v1296_v9, %v1833_v27  ;;  %v641_v51 = vmul.f32 %v1294_v7, %v1833_v27  ;;  %v1334_v7 = vpop.eup %1333 }
 0x11c   : > { %v646_v55 = vmul.f32 %v1302_v18, %v1831_v26  ;;  %v650_v56 = vmul.f32 %v1310_v28, %v1831_v26  ;;  %v654_v57 = vmul.f32 %v1320_v38, %v1831_v26  ;;  %v645_v59 = vmul.f32 %v1304_v20, %v1833_v27  ;;  %v1336_v12 = vpop.eup %1335 }
 0x11d   : > { %v649_v60 = vmul.f32 %v1312_v30, %v1833_v27  ;;  %v653_v61 = vmul.f32 %v1314_v32, %v1833_v27  ;;  %v658_v0 = vmul.f32 %v1326_v50, %v1831_v26  ;;  %v657_v1 = vmul.f32 %v1328_v54, %v1833_v27  ;;  %v1338_v17 = vpop.eup %1337 }
 0x11e   : > { %v491_v35 = vpop.permute.xlu1 %490  ;;  %v525_v36 = vpop.permute.xlu0 %524  ;;  %v669_v2 = vadd.f32 %v638_v44, %v637_v47  ;;  %v678_v8 = vadd.f32 %v642_v46, %v641_v51  ;;  %v661_v18 = vmul.f32 %v1336_v12, %v1833_v27  ;;  %v687_v19 = vadd.f32 %v646_v55, %v645_v59 }
 0x11f   : > { %v568_v40 = vadd.f32 %v491_v35, %v1815_v62  ;;  %v575_v41 = vadd.f32 %v525_v36, %v1806_v53  ;;  %v696_v20 = vadd.f32 %v650_v56, %v649_v60  ;;  %v705_v21 = vadd.f32 %v654_v57, %v653_v61  ;;  %v1340_v23 = vpop.eup %1339 }
 0x120   : > { %v1342_v30 = vpop.eup %1341 }
 0x121   : > { %1343 = vtanh.f32 %v568_v40 }
 0x122   : > { %v510_v48 = vpop.permute.xlu1 %509  ;;  %v544_v49 = vpop.permute.xlu0 %543  ;;  %1345 = vtanh.f32 %v575_v41 }
 0x123   : > { %v572_v45 = vadd.f32 %v510_v48, %v1815_v62  ;;  %v579_v52 = vadd.f32 %v544_v49, %v1806_v53  ;;  %1347 = vtanh.f32 %v577_v39  ;;  %v662_v53 = vmul.f32 %v1330_v58, %v1831_v26 }
 0x124   : > { %v666_v48 = vmul.f32 %v1342_v30, %v1831_v26  ;;  %v714_v49 = vadd.f32 %v658_v0, %v657_v1 }
 0x125   : > { %1349 = vtanh.f32 %v572_v45 }
 0x126   : > { %v1856_v3 = vpop.permute.xlu1 %629  ;;  %v529_v5 = vpop.permute.xlu0 %528  ;;  %1351 = vtanh.f32 %v579_v52 }
 0x127   : > { %v639_v9 = vmul.f32 %v1308_v24, %v1856_v3  ;;  %v643_v11 = vmul.f32 %v1827_v22, %v1856_v3  ;;  %v647_v13 = vmul.f32 %v1316_v34, %v1856_v3  ;;  %v651_v14 = vmul.f32 %v1322_v42, %v1856_v3 }
 0x128   : > { %v655_v15 = vmul.f32 %v1332_v63, %v1856_v3  ;;  %v576_v16 = vadd.f32 %v529_v5, %v1815_v62  ;;  %v659_v24 = vmul.f32 %v1338_v17, %v1856_v3  ;;  %v723_v63 = vadd.f32 %v662_v53, %v661_v18 }
 0x129   : > { %v670_v25 = vadd.f32 %v669_v2, %v639_v9  ;;  %v679_v22 = vadd.f32 %v678_v8, %v643_v11  ;;  %v688_v36 = vadd.f32 %v687_v19, %v647_v13  ;;  %v697_v38 = vadd.f32 %v696_v20, %v651_v14 }
 0x12a   : > { %1353 = vtanh.f32 %v576_v16  ;;  %v548_v28 = vpop.permute.xlu1 %547  ;;  %v635_v29 = vpop.permute.xlu0 %634  ;;  %v706_v39 = vadd.f32 %v705_v21, %v655_v15  ;;  %v715_v57 = vadd.f32 %v714_v49, %v659_v24 }
 0x12b   : > { %v580_v31 = vadd.f32 %v548_v28, %v1815_v62  ;;  %v640_v32 = vmul.f32 %v1318_v37, %v635_v29  ;;  %v644_v33 = vmul.f32 %v1324_v43, %v635_v29  ;;  %v648_v34 = vmul.f32 %v1334_v7, %v635_v29  ;;  %v1344_v35 = vpop.eup %1343 }
 0x12c   : > { %v652_v40 = vmul.f32 %v1340_v23, %v635_v29  ;;  %v1346_v41 = vpop.eup %1345  ;;  %v656_v42 = vmul.f32 %v1344_v35, %v635_v29 }
 0x12d   : > { %1355 = vtanh.f32 %v580_v31  ;;  %v671_v44 = vadd.f32 %v670_v25, %v640_v32  ;;  %v680_v46 = vadd.f32 %v679_v22, %v644_v33  ;;  %v1348_v47 = vpop.eup %1347  ;;  %v689_v50 = vadd.f32 %v688_v36, %v648_v34 }
 0x12e   : > { %v698_v51 = vadd.f32 %v697_v38, %v652_v40  ;;  %v663_v37 = vmul.f32 %v1346_v41, %v1856_v3  ;;  %v707_v52 = vadd.f32 %v706_v39, %v656_v42  ;;  %v665_v26 = vmul.f32 %v1348_v47, %v1833_v27 }
 0x12f   : > { %v1350_v62 = vpop.eup %1349  ;;  %v672_v43 = vrot.slane %v671_v44, 4  ;;  %v681_v45 = vrot.slane %v680_v46, 4  ;;  %v690_v55 = vrot.slane %v689_v50, 4 }
 0x130   : > { %v660_v54 = vmul.f32 %v1350_v62, %v635_v29  ;;  %v699_v56 = vrot.slane %v698_v51, 4  ;;  %v1352_v58 = vpop.eup %1351  ;;  %v708_v61 = vrot.slane %v707_v52, 4  ;;  %v724_v9 = vadd.f32 %v723_v63, %v663_v37 }
 0x131   : > { %v673_v59 = vadd.f32 %v672_v43, %v671_v44  ;;  %v682_v60 = vadd.f32 %v681_v45, %v680_v46  ;;  %v691_v0 = vadd.f32 %v690_v55, %v689_v50  ;;  %v667_v12 = vmul.f32 %v1352_v58, %v1856_v3 }
 0x132   : > { %v700_v1 = vadd.f32 %v699_v56, %v698_v51  ;;  %v716_v2 = vadd.f32 %v715_v57, %v660_v54  ;;  %v709_v8 = vadd.f32 %v708_v61, %v707_v52  ;;  %v732_v21 = vadd.f32 %v666_v48, %v665_v26 }
 0x133   : > { %v674_v5 = vrot.slane %v673_v59, 2  ;;  %v683_v7 = vrot.slane %v682_v60, 2  ;;  %v692_v13 = vrot.slane %v691_v0, 2  ;;  %v747_v55 = vrot.slane %v1780_v10, %v1768_v4  ;;  %v1285_v10 = vld [vmem:[%s1760_s27] sm:$0xff]  }
 0x134   : > { %v1354_v11 = vpop.eup %1353  ;;  %v701_v14 = vrot.slane %v700_v1, 2  ;;  %v717_v15 = vrot.slane %v716_v2, 4  ;;  %v710_v20 = vrot.slane %v709_v8, 2  ;;  %v733_v3 = vadd.f32 %v732_v21, %v667_v12  ;;  %v1290_v12 = vld [vmem:[%s1760_s27 + $0x28] sm:$0xff]  }
 0x135   : > { %v664_v16 = vmul.f32 %v1354_v11, %v635_v29  ;;  %v675_v17 = vadd.f32 %v674_v5, %v673_v59  ;;  %v684_v19 = vadd.f32 %v683_v7, %v682_v60  ;;  %v693_v53 = vadd.f32 %v692_v13, %v691_v0  ;;  %v784_v5 = vld [vmem:[#allocation2] sm:$0xff]  ;;  %v1289_v11 = vld [vmem:[%s1760_s27 + $0x20] sm:$0xff]  }
 0x136   : > { %v702_v18 = vadd.f32 %v701_v14, %v700_v1  ;;  %v718_v27 = vadd.f32 %v717_v15, %v716_v2  ;;  %v711_v34 = vadd.f32 %v710_v20, %v709_v8  ;;  %v753_v59 = vrot.slane %v1776_v6, %v1768_v4  ;;  %v1286_v2 = vld [vmem:[%s1760_s27 + $0x8] sm:$0xff]   ;;  %v1287_v4 = vld [vmem:[%s1760_s27 + $0x10] sm:$0xff]   ;;  %v1288_v6 = vld [vmem:[%s1760_s27 + $0x18] sm:$0xff]  }
 0x137   : > { %v1356_v23 = vpop.eup %1355  ;;  %v676_v24 = vrot.slane %v675_v17, 1  ;;  %v685_v25 = vrot.slane %v684_v19, 1  ;;  %v725_v22 = vadd.f32 %v724_v9, %v664_v16  ;;  %v694_v30 = vrot.slane %v693_v53, 1  ;;  %v1291_v14 = vld [vmem:[%s1760_s27 + $0x30] sm:$0xff]   ;;  %v1292_v15 = vld [vmem:[%s1760_s27 + $0x38] sm:$0xff]   ;;  %s1168_s27 = sshll.u32 %s1535_s24, 7 }
 0x138   : > { %v668_v28 = vmul.f32 %v1356_v23, %v635_v29  ;;  %v719_v31 = vrot.slane %v718_v27, 2  ;;  %v703_v38 = vrot.slane %v702_v18, 1  ;;  %v712_v46 = vrot.slane %v711_v34, 1  ;;  %s1899_s16 = scalar_lea.hbm %s1982_s5, %s1168_s27  ;;  %s1906_s29 = scalar_lea.hbm %s1983_s6, %s1168_s27 }
 0x139   : > { %v677_v32 = vadd.f32 %v676_v24, %v675_v17  ;;  %v686_v33 = vadd.f32 %v685_v25, %v684_v19  ;;  %v726_v35 = vrot.slane %v725_v22, 4  ;;  %v695_v36 = vadd.f32 %v694_v30, %v693_v53 }
 0x13a   : > { %v720_v39 = vadd.f32 %v719_v31, %v718_v27  ;;  %v734_v40 = vadd.f32 %v733_v3, %v668_v28  ;;  %v704_v29 = vadd.f32 %v703_v38, %v702_v18  ;;  %v713_v43 = vadd.f32 %v712_v46, %v711_v34 }
 0x13b   : > { %v727_v41 = vadd.f32 %v726_v35, %v725_v22  ;;  %v764_v42 = vsel %vm763_vm2, %v686_v33, %v677_v32  ;;  %vm748_vm9 = vcmp.eq.s32.totalorder %v747_v55, 1  ;;  %v1553_v1 = vmov 0.0  }
 0x13c   : > { %v735_v44 = vrot.slane %v734_v40, 4  ;;  %v766_v48 = vsel %vm765_vm3, %v695_v36, %v764_v42  ;;  %v721_v49 = vrot.slane %v720_v39, 1  ;;  %1183 = vmatprep.subr.bf16.mxu0 %v1553_v1  ;;  %390 = vst.msk [vmem:[#allocation3] sm:$0xff] %vm388_vm1, %v1553_v1  ;;  %1199 = vmatprep.mubr.msk.bf16.mxu0 %vm1554_vm10, %v1553_v1 }
 0x13d   : > { %v728_v47 = vrot.slane %v727_v41, 2  ;;  %v768_v37 = vsel %vm767_vm4, %v704_v29, %v766_v48  ;;  %1184 = vmatpush3.bf16.msra.mxu0 %v1285_v10 }
 0x13e   : > { %v736_v50 = vadd.f32 %v735_v44, %v734_v40  ;;  %v722_v52 = vadd.f32 %v721_v49, %v720_v39  ;;  %v770_v57 = vsel %vm769_vm5, %v713_v43, %v768_v37  ;;  %1185 = vmatprep.subr.bf16.mxu0 %v1553_v1 }
 0x13f   : > { %v729_v51 = vadd.f32 %v728_v47, %v727_v41 }
 0x140   : > { %v737_v62 = vrot.slane %v736_v50, 2  ;;  %v772_v61 = vsel %vm771_vm6, %v722_v52, %v770_v57 }
 0x141   : > { %v730_v45 = vrot.slane %v729_v51, 1  ;;  %1186 = vmatpush3.bf16.msra.mxu0 %v1286_v2 }
 0x142   : > { %v738_v54 = vadd.f32 %v737_v62, %v736_v50  ;;  %1187 = vmatprep.subr.bf16.mxu0 %v1553_v1 }
 0x143   : > { %v731_v56 = vadd.f32 %v730_v45, %v729_v51  ;;  %v799_v21 = vld [vmem:[#allocation3] sm:$0xff] }
 0x144   : > { %v739_v58 = vrot.slane %v738_v54, 1 }
 0x145   : > { %v774_v63 = vsel %vm773_vm7, %v731_v56, %v772_v61  ;;  %1188 = vmatpush3.bf16.msra.mxu0 %v1287_v4 }
 0x146   : > { %v740_v60 = vadd.f32 %v739_v58, %v738_v54  ;;  %1189 = vmatprep.subr.bf16.mxu0 %v1553_v1 }
 0x148   : > { %v776_v26 = vsel %vm775_vm8, %v740_v60, %v774_v63 }
 0x149   : > { %v1878_v0 = vsel %vm748_vm9, %v776_v26, %v753_v59  ;;  %1190 = vmatpush3.bf16.msra.mxu0 %v1288_v6 }
 0x14a   : > { %785 = vmax.xlane.f32.xlu1 %v1878_v0  ;;  %1191 = vmatprep.subr.bf16.mxu0 %v1553_v1 }
 0x14d   : > { %1192 = vmatpush3.bf16.msra.mxu0 %v1289_v11 }
 0x14e   : > { %1193 = vmatprep.subr.bf16.mxu0 %v1553_v1 }
 0x151   : > { %1194 = vmatpush3.bf16.msra.mxu0 %v1290_v12 }
 0x152   : > { %1195 = vmatprep.subr.bf16.mxu0 %v1553_v1 }
 0x155   : > { %1196 = vmatpush3.bf16.msra.mxu0 %v1291_v14 }
 0x156   : > { %1197 = vmatprep.subr.bf16.mxu0 %v1553_v1 }
 0x159   : > { %1198 = vmatpush3.bf16.msra.mxu0 %v1292_v15 }
 0x1d7   : > { %v786_v7 = vpop.xlane.xlu1 %785 }
 0x1d8   : > { %v787_v8 = vmax.f32 %v784_v5, %v786_v7 }
 0x1da   : > { %v788_v9 = vsub.f32 %v784_v5, %v787_v8  ;;  %920 = vst.msk [vmem:[#allocation2] sm:$0xff] %vm388_vm1, %v787_v8  ;;  %793 = vperm.xlu0 %1283, %v787_v8  }
 0x1dc   : > { %v789_v18 = vmul.f32 1.442695, %v788_v9 }
 0x1e1   : > { %v936_v13 = vld [vmem:[#allocation2] sm:$0xff] }
 0x1e2   : > { %939 = vperm.xlu1 %1284, %v936_v13  }
 0x259   : > { %v794_v16 = vpop.permute.xlu0 %793 }
 0x25a   : > { %v796_v17 = vsub.f32 %v1878_v0, %v794_v16 }
 0x25c   : > { %v797_v19 = vmul.f32 1.442695, %v796_v17 }
 0x25e   : > { %1357 = vpow2.f32 %v797_v19 }
 0x25f   : > { %1359 = vpow2.f32 %v789_v18 }
 0x261   : > { %v940_v33 = vpop.permute.xlu1 %939 }
 0x262   : > { %v942_v34 = vsub.f32 %v1878_v0, %v940_v33 }
 0x264   : > { %v943_v35 = vmul.f32 1.442695, %v942_v34 }
 0x268   : > { %v1358_v20 = vpop.eup %1357 }
 0x269   : > { %801 = vadd.xlane.f32.xlu0 %v1358_v20  ;;  %v813_v53 = vpack.c.bf16 %v1358_v20, %v1358_v20  ;;  %v1360_v27 = vpop.eup %1359 }
 0x26a   : > { %v800_v23 = vmul.f32 %v1360_v27, %v799_v21 }
 0x26b   : > { %1200 = vmatmul.mubr.bf16.vlgmr.msra.gmra.mrb[0].mxu0 %v813_v53 }
 0x27f   : > { %809 = vperm.xlu0 %1283, %v1360_v27  }
 0x2f6   : > { %v802_v24 = vpop.xlane.xlu0 %801 }
 0x2f7   : > { %v803_v25 = vadd.f32 %v802_v24, %v800_v23 }
 0x2f9   : > { %805 = vst.msk [vmem:[#allocation3] sm:$0xff] %vm388_vm1, %v803_v25 }
 0x2fe   : > { %v810_v36 = vpop.permute.xlu0 %809 }
 0x2ff   : > { %v812_v38 = vmul.f32 0.0, %v810_v36 }
 0x300   : > { %v924_v22 = vld [vmem:[#allocation3] sm:$0xff] }
 0x301   : > { %1361 = vrcp.f32 %v924_v22 }
 0x302   : > { %1363 = vpow2.f32 %v943_v35 }
 0x30b   : > { %v1362_v28 = vpop.eup %1361 }
 0x30c   : > { %930 = vperm.xlu1 %1284, %v1362_v28   ;;  %v1364_v40 = vpop.eup %1363 }
 0x33e   : > { %v912_v30 = vpop.f32.mrb[0].mxu0 }
 0x33f   : > { %v1201_v31 = vpop.f32.mrb[1].mxu0  ;;  %v918_v39 = vadd.f32 %v912_v30, %v812_v38 }
 0x340   : > { %v915_v3 = vpop.f32.mrb[2].mxu0 }
 0x341   : > { %v1202_v32 = vpop.f32.mrb[3].mxu0 }
 0x38b   : > { %v931_v41 = vpop.permute.xlu1 %930 }
 0x38c   : > { %v933_v42 = vmul.f32 %v931_v41, %v918_v39  ;;  %v945_v44 = vmul.f32 %v1364_v40, %v931_v41 }
 0x38e   : > { %934 = vst [vmem:[%s364_s15] sm:$0xff] %v933_v42  ;;  %946 = vst [vmem:[%s371_s28] sm:$0xff] %v945_v44 }
 0x38f   : > { %1438 = shalt.err (!%p1435_p1)
}
 0x390   : > { %s1439_s27 = scalar_lea.hbm %s1899_s16, 128  ;;  %s1443_s20 = scalar_lea.hbm %s1982_s5, 256 }
 0x391   : > { %p1440_p6 = scmp.ne.s32.totalorder %s1899_s16, %s1439_s27  ;;  %p1444_p4 = scmp.lt.u32.totalorder %s1899_s16, %s1982_s5 }
 0x392   : > { %p1445_p8 = scmp.lt.u32.totalorder %s1443_s20, %s1439_s27  ;;  %p1447_p3 = scmp.lt.u32.totalorder %s1439_s27, %s1899_s16 }
 0x393   : > { %p1441_p2 = pnand %p1440_p6, %p1998_p11 }
 0x394   : > { %p1446_p0 = por %p1445_p8, %p1444_p4 }
 0x395   : > { %p1442_p5 = pneg %p1441_p2 }
 0x396   : > { %p1448_p13 = por %p1447_p3, %p1446_p0 }
 0x398   : > { %p1449_p7 = pnand %p1448_p13, %p1442_p5 }
 0x39a   : > { %1452 = shalt.err (!%p1449_p7)
}
 0x39b   : > { %1207 = dma.vmem_to_hbm [thread:$0]  (%p1998_p11), %s1901_s8, 128, %s1899_s16, %s948_s13  }
 0x39c   : > { %s953_s24 = scalar_lea.sflag [#allocation12], %s1748_s7  ;;  %s1453_s17 = scalar_lea.vmem %s1908_s9, 128 }
 0x39d   : > { %p1454_p10 = scmp.ne.s32.totalorder %s1908_s9, %s1453_s17  ;;  %s1556_s14 = smov [#allocation11]  }
 0x39e   : > { %s1457_s18 = sshll.u32 %s1556_s14, 4  ;;  %s1458_s18 = int_to_ptr.vmem [resolvable:$false] %s1457_s18 }
 0x39f   : > { %p1455_p12 = pnand %p1454_p10, %p1998_p11  ;;  %s1459_s1 = scalar_lea.vmem %s1458_s18, 256 }
 0x3a0   : > { %p1460_p1 = scmp.lt.s32.totalorder %s1908_s9, %s1458_s18  ;;  %p1461_p6 = scmp.lt.s32.totalorder %s1459_s1, %s1453_s17 }
 0x3a1   : > { %p1456_p9 = pneg %p1455_p12 }
 0x3a2   : > { %p1462_p2 = por %p1461_p6, %p1460_p1 }
 0x3a4   : > { %p1463_p5 = pnand %p1462_p2, %p1456_p9 }
 0x3a6   : > { %1466 = shalt.err (!%p1463_p5)
}
 0x3a7   : > { %s1467_s7 = scalar_lea.hbm %s1906_s29, 128  ;;  %s1471_s13 = scalar_lea.hbm %s1983_s6, 256 }
 0x3a8   : > { %p1468_p4 = scmp.ne.s32.totalorder %s1906_s29, %s1467_s7  ;;  %p1472_p3 = scmp.lt.u32.totalorder %s1906_s29, %s1983_s6 }
 0x3a9   : > { %p1473_p13 = scmp.lt.u32.totalorder %s1471_s13, %s1467_s7  ;;  %p1475_p10 = scmp.lt.u32.totalorder %s1467_s7, %s1906_s29 }
 0x3aa   : > { %p1469_p8 = pnand %p1468_p4, %p1998_p11 }
 0x3ab   : > { %p1474_p7 = por %p1473_p13, %p1472_p3 }
 0x3ac   : > { %p1470_p0 = pneg %p1469_p8 }
 0x3ad   : > { %p1476_p12 = por %p1475_p10, %p1474_p7 }
 0x3af   : > { %p1477_p9 = pnand %p1476_p12, %p1470_p0 }
 0x3b1   : > { %1480 = shalt.err (!%p1477_p9)
}
 0x3b2   : > { %1208 = dma.vmem_to_hbm [thread:$0]  (%p1998_p11), %s1908_s9, 128, %s1906_s29, %s953_s24  }
 0x3b3 PF: > { %s991_s28 = sand.u32 1, %s1523_s21   ;;  %p1999_p1 = scmp.ne.s32.totalorder %s1992_s12, 0 }
 0x3b4   : > { %p2000_p6 = scmp.ge.s32.totalorder %s1543_s26, 2  ;;  %s992_s20 = scalar_lea.sflag [#allocation7], %s991_s28 }
 0x3b6   : > { %p1219_p2 = pnand %p2000_p6, %p1999_p1 }
 0x3b8   : > { %1514 = dma.done.wait (!%p1219_p2), %s992_s20, 128  }
 0x3b9   : > { %1516 = vsyncadd (!%p1219_p2), %s992_s20, 4294967168  ;;  %s1001_s30 = scalar_lea.sflag [#allocation12], %s991_s28 }
 0x3ba   : > { %1518 = dma.done.wait (!%p1219_p2), %s1001_s30, 128  }
 0x3bb   : > { %1520 = vsyncadd (!%p1219_p2), %s1001_s30, 4294967168  ;;  %s29_s26 = sadd.s32 1, %s1543_s26   ;;  %s2001_s10 = sld [smem:[#allocation17_spill]] }
 0x3bc   : > { %p26_p5 = scmp.ge.s32.totalorder %s29_s26, 4   ;;  %s2002_s21 = smov %s1527_s22 }
 0x3bd   : > { %s2003_s22 = smov %s1531_s23  ;;  %s2004_s23 = smov %s1648_s11 }
 0x3be   : > { %s2005_s24 = smov %s1539_s25  ;;  %28 = sbr.rel (!%p26_p5) target bundleno = 12 (0xc), region = 130 }
 0x3c1   : > { %s2006_s25 = smov %s2001_s10 }
 0x3c5   :  { %1006 = vsyncpa [#allocation6], 1 }
 0x3c6   :  { %1008 = vsyncpa [#allocation6 + $0x1], 1 }
 0x3c7   :  { %1009 = vsyncpa [#allocation9], 1 }
 0x3c8   :  { %1011 = vsyncpa [#allocation9 + $0x1], 1 }
 0x3c9   :  { %1012 = vsyncpa [#allocation7], 1 }
 0x3ca   :  { %1014 = vsyncpa [#allocation7 + $0x1], 1 }
 0x3cb   :  { %1015 = vsyncpa [#allocation12], 1 }
 0x3cc   :  { %1017 = vsyncpa [#allocation12 + $0x1], 1 }

</bundles_post_ra>
